<compile_context>
chip_gen: v7x
topology: tpu7x:2x2x1
jax: 0.10.0
libtpu: 0.0.40
codegen_flags: <defaults>
</compile_context>

<pallas_src>
import jax
import jax.numpy as jnp
from jax.experimental import pallas as pl
from jax.experimental.pallas import tpu as pltpu


def fused_forward_kernel(x0_ref, x1_ref, x2_ref,
                         bn_scale_ref, bn_shift_ref,
                         w_attn_ref, b_attn_ref,
                         conv_mat_ref, conv_b_ref,
                         w1t_ref, b1_ref,
                         o_ref):
    num_mod = 3
    tb, d = o_ref.shape               # (TB, 128)

    w_attn = w_attn_ref[...].astype(jnp.float32)      # (1, D)
    b_attn = b_attn_ref[0]                            # scalar

    # --- BatchNorm1d (inference affine) + attention logits, one slab per modality ---
    xs = (x0_ref, x1_ref, x2_ref)
    normal = []
    logits = []
    for m in range(num_mod):
        ym = xs[m][...].astype(jnp.float32) * bn_scale_ref[m] + bn_shift_ref[m]   # (TB, D)
        normal.append(ym)
        # Linear(D -> 1): VPU multiply + lane reduce; deliberately NOT an MXU matmul.
        logits.append(jnp.sum(ym * w_attn, axis=-1, keepdims=True) + b_attn)      # (TB, 1)

    # --- softmax over the modality axis: elementwise over the 3 (TB,1) columns ---
    m_max = jnp.maximum(jnp.maximum(logits[0], logits[1]), logits[2])
    exps = [jnp.exp(l - m_max) for l in logits]
    inv_denom = pl.reciprocal(exps[0] + exps[1] + exps[2], approx=False)

    # --- residual: summed = normal + softmax * normal, cast to bf16 MXU operands ---
    summed = [(normal[m] * (1.0 + exps[m] * inv_denom)).astype(jnp.bfloat16)
              for m in range(num_mod)]
    s_cat = jnp.concatenate(summed, axis=-1)                        # (TB, 3D) bf16

    # --- CrossConvolution as ONE banded MXU matmul (Conv3d collapsed to 3 taps
    #     along D), then bias + LeakyReLU(0.1) and sum over output channels ---
    conv = jnp.dot(s_cat, conv_mat_ref[...],
                   preferred_element_type=jnp.float32)              # (TB, 3D) f32
    conv = conv + conv_b_ref[...]                                   # (1, 3D) bias row
    conv = jnp.where(conv > 0, conv, 0.1 * conv)                    # LeakyReLU(0.1)
    fused = conv[:, 0:d] + conv[:, d:2 * d] + conv[:, 2 * d:3 * d]  # sum over out-chan

    # --- fc1: Linear(D, D) on the MXU (bf16 operands, f32 accumulation) ---
    out = jnp.dot(fused.astype(jnp.bfloat16), w1t_ref[...],
                  preferred_element_type=jnp.float32)
    o_ref[...] = (out + b1_ref[...]).astype(o_ref.dtype)


def _round_up(x, m):
    return (x + m - 1) // m * m


def _pick_batch_tile(batch):
    """Tile the batch so big batches get an even step count >= 2 (v7x megacore)
    while keeping tiles large enough to amortize the ~0.35us/step overhead and
    minimizing padded rows."""
    b8 = _round_up(max(batch, 1), 8)
    if b8 < 256:
        # Tiny batch: a single step; splitting would only add pipeline overhead.
        return b8
    steps = 2 * pl.cdiv(b8, 1024)          # even, >= 2; each tile <= ~512 rows
    return _round_up(pl.cdiv(b8, steps), 8)


def _split_modalities(modalities):
    """Return a list of (B, D) per-modality slabs without any relayout copy
    (a (B,1,D) -> (B,D) squeeze is free)."""
    if isinstance(modalities, (list, tuple)):
        parts = []
        for m in modalities:
            if m.ndim == 2:
                parts.append(m)
            else:
                for j in range(m.shape[1]):
                    parts.append(m[:, j, :])
        return parts
    return [modalities[:, j, :] for j in range(modalities.shape[1])]


def _build_conv_band_matrix(conv_w, d, dtype=jnp.bfloat16):
    """Banded (3D, 3D) matrix so that  conv_out = s_cat @ M  reproduces the
    Conv3d(3,3,(3,3,3),pad=1) applied to (B,3,D,1,1): only the kH=kW=1 center
    taps touch real data, so it is a 3-tap conv along D with zero padding.
    Row index = (ci, i) input feature, col index = (co, j) output feature."""
    taps = conv_w[:, :, :, 1, 1]                      # (co, ci, 3)
    ii = jnp.arange(d)[:, None]
    jj = jnp.arange(d)[None, :]
    diff = ii - jj
    sel_prev = (diff == -1).astype(jnp.float32)       # tap 0: contributes s[j-1]
    sel_ctr = (diff == 0).astype(jnp.float32)         # tap 1: contributes s[j]
    sel_next = (diff == 1).astype(jnp.float32)        # tap 2: contributes s[j+1]
    rows = []
    for ci in range(3):
        cols = []
        for co in range(3):
            blk = (taps[co, ci, 0] * sel_prev
                   + taps[co, ci, 1] * sel_ctr
                   + taps[co, ci, 2] * sel_next)
            cols.append(blk)
        rows.append(jnp.concatenate(cols, axis=1))
    return jnp.concatenate(rows, axis=0).astype(dtype)   # (3D, 3D)


def multimodal_fusion_forward(modalities, params, *, batch_tile=None):
    """modalities: list of (B, m_i, z_dim) arrays (concatenated along dim 1 in the
    original forward) or a single (B, 3, z_dim) array.  Returns (B, z_dim)."""
    parts = _split_modalities(modalities)
    assert len(parts) == 3, "Conv3d(3,3)/BatchNorm1d(3) fix num_modalities to 3"
    b, d = parts[0].shape
    out_dtype = parts[0].dtype

    # Fold module parameters into kernel-friendly forms (host-side, tiny).
    eps = params["bn_eps"]
    bn_scale = params["bn_gamma"] / jnp.sqrt(params["bn_var"] + eps)          # (3,)
    bn_shift = params["bn_beta"] - params["bn_mean"] * bn_scale               # (3,)
    conv_mat = _build_conv_band_matrix(params["conv_w"], d, jnp.bfloat16)     # (3D, 3D)
    conv_b_row = jnp.repeat(params["conv_b"], d).reshape(1, 3 * d)            # (1, 3D)
    w1t = params["fc1_w"].T.astype(jnp.bfloat16)                              # (D, D)
    b1 = params["fc1_b"].reshape(1, d)                                        # (1, D)

    tb = batch_tile if batch_tile is not None else _pick_batch_tile(b)
    bp = _round_up(b, tb)
    if bp != b:
        parts = [jnp.pad(p, ((0, bp - b), (0, 0))) for p in parts]

    grid = (bp // tb,)
    flops = bp * (2 * (3 * d) * (3 * d) + 2 * d * d + 40 * d)
    bytes_accessed = 4 * (3 * bp * d + bp * d) + 2 * (9 * d * d + d * d) + 4 * (8 * d + 16)

    mod_spec = pl.BlockSpec((tb, d), lambda i: (i, 0))
    out = pl.pallas_call(
        fused_forward_kernel,
        out_shape=jax.ShapeDtypeStruct((bp, d), out_dtype),
        grid=grid,
        in_specs=[
            # per-modality batch slabs: new tile every grid step (double-buffered)
            mod_spec, mod_spec, mod_spec,
            # BatchNorm per-channel affine (scalars)
            pl.BlockSpec(memory_space=pltpu.SMEM),
            pl.BlockSpec(memory_space=pltpu.SMEM),
            # attention fc weight (VMEM, lane-dense) / bias (SMEM scalar)
            pl.BlockSpec((1, d), lambda i: (0, 0)),
            pl.BlockSpec(memory_space=pltpu.SMEM),
            # banded Conv3d tap matrix (bf16) / bias row -- constant index_map => VMEM resident
            pl.BlockSpec((3 * d, 3 * d), lambda i: (0, 0)),
            pl.BlockSpec((1, 3 * d), lambda i: (0, 0)),
            # fc1 weight (transposed, bf16) / bias -- constant index_map => VMEM resident
            pl.BlockSpec((d, d), lambda i: (0, 0)),
            pl.BlockSpec((1, d), lambda i: (0, 0)),
        ],
        out_specs=pl.BlockSpec((tb, d), lambda i: (i, 0)),
        compiler_params=pltpu.CompilerParams(dimension_semantics=("parallel",)),
        cost_estimate=pl.CostEstimate(
            flops=int(flops),
            transcendentals=int(4 * bp),
            bytes_accessed=int(bytes_accessed),
        ),
    )(
        parts[0], parts[1], parts[2],
        bn_scale.astype(jnp.float32), bn_shift.astype(jnp.float32),
        params["attn_w"].astype(jnp.float32), params["attn_b"].astype(jnp.float32),
        conv_mat, conv_b_row.astype(jnp.float32),
        w1t, b1.astype(jnp.float32),
    )
    return out[:b]


def reference_forward(modalities, params):
    """Pure-JAX reference with the same math as the PyTorch forward."""
    x = jnp.concatenate(modalities, axis=1)
    b, m, d = x.shape
    eps = params["bn_eps"]
    normal = ((x - params["bn_mean"][None, :, None])
              / jnp.sqrt(params["bn_var"][None, :, None] + eps)
              * params["bn_gamma"][None, :, None]
              + params["bn_beta"][None, :, None])
    logits = jnp.einsum("bmd,od->bmo", normal, params["attn_w"]) + params["attn_b"]
    attn = jax.nn.softmax(logits, axis=1)
    sum_result = normal + attn * normal
    fused = jax.lax.conv_general_dilated(
        sum_result.reshape(b, m, d, 1, 1), params["conv_w"],
        window_strides=(1, 1, 1), padding=((1, 1), (1, 1), (1, 1)),
        dimension_numbers=("NCDHW", "OIDHW", "NCDHW"))
    fused = fused + params["conv_b"].reshape(1, m, 1, 1, 1)
    fused = jnp.where(fused > 0, fused, 0.1 * fused)
    pooled = jnp.sum(fused, axis=1).reshape(b, d)
    return pooled @ params["fc1_w"].T + params["fc1_b"]


if __name__ == "__main__":
    batch = 32
    num_modalities = 3     # fixed by Conv3d(3, 3, ...) / BatchNorm1d(3)
    z_dim = 128            # module default (fc = Linear(128, 1))

    key = jax.random.PRNGKey(0)
    ks = jax.random.split(key, 13)

    # Input: a list of per-modality tensors, concatenated along dim 1 (as in forward()).
    modalities = [jax.random.normal(ks[i], (batch, 1, z_dim), jnp.float32)
                  for i in range(num_modalities)]

    # Deterministic parameters mimicking the PyTorch defaults (plus non-trivial BN stats).
    bound = 1.0 / (z_dim ** 0.5)
    cbound = 1.0 / ((3 * 3 * 3 * 3) ** 0.5)     # Conv3d fan_in = in_ch * kD*kH*kW = 81
    params = {
        "bn_gamma": jax.random.uniform(ks[3], (num_modalities,), jnp.float32, 0.5, 1.5),
        "bn_beta": 0.1 * jax.random.normal(ks[4], (num_modalities,), jnp.float32),
        "bn_mean": 0.1 * jax.random.normal(ks[5], (num_modalities,), jnp.float32),
        "bn_var": jax.random.uniform(ks[6], (num_modalities,), jnp.float32, 0.5, 1.5),
        "bn_eps": 1e-5,
        "attn_w": jax.random.uniform(ks[7], (1, z_dim), jnp.float32, -bound, bound),
        "attn_b": jax.random.uniform(ks[8], (1,), jnp.float32, -bound, bound),
        "conv_w": jax.random.uniform(ks[9], (3, 3, 3, 3, 3), jnp.float32, -cbound, cbound),
        "conv_b": jax.random.uniform(ks[10], (3,), jnp.float32, -cbound, cbound),
        "fc1_w": jax.random.uniform(ks[11], (z_dim, z_dim), jnp.float32, -bound, bound),
        "fc1_b": jax.random.uniform(ks[12], (z_dim,), jnp.float32, -bound, bound),
    }

    # batch_tile=16: deliberately small so the toy batch exercises a multi-step,
    # double-buffered grid (the production default right-sizes tiles up to 512 rows).
    out = multimodal_fusion_forward(modalities, params, batch_tile=16)
    out = jax.block_until_ready(out)

    ref = reference_forward(modalities, params)
    assert out.shape == (batch, z_dim)
    # Tolerance covers the bf16 MXU operands of the banded-conv and fc1 matmuls.
    assert jnp.allclose(out, ref, atol=3e-2, rtol=3e-2), float(jnp.max(jnp.abs(out - ref)))
    print("KERNEL_OK")
</pallas_src>

<mosaic_0001>
module attributes {stable_mosaic.version = 11 : i64} {
  func.func @fused_forward_kernel(%arg0: i32, %arg1: memref<16x128xf32, #tpu.memory_space<vmem>>, %arg2: memref<16x128xf32, #tpu.memory_space<vmem>>, %arg3: memref<16x128xf32, #tpu.memory_space<vmem>>, %arg4: memref<3xf32, #tpu.memory_space<smem>>, %arg5: memref<3xf32, #tpu.memory_space<smem>>, %arg6: memref<1x128xf32, #tpu.memory_space<vmem>>, %arg7: memref<1xf32, #tpu.memory_space<smem>>, %arg8: memref<384x384xbf16, #tpu.memory_space<vmem>>, %arg9: memref<1x384xf32, #tpu.memory_space<vmem>>, %arg10: memref<128x128xbf16, #tpu.memory_space<vmem>>, %arg11: memref<1x128xf32, #tpu.memory_space<vmem>>, %arg12: memref<16x128xf32, #tpu.memory_space<vmem>>) attributes {dimension_semantics = [#tpu.dimension_semantics<parallel>], iteration_bounds = array<i64: 2>, scalar_prefetch = 0 : i64, scratch_operands = 0 : i64, tpu.core_type = #tpu.core_type<tc>, window_params = [{transform_indices = @transform_0, window_bounds = array<i64: 16, 128>}, {transform_indices = @transform_1, window_bounds = array<i64: 16, 128>}, {transform_indices = @transform_2, window_bounds = array<i64: 16, 128>}, {transform_indices = @transform_3, window_bounds = array<i64: 3>}, {transform_indices = @transform_4, window_bounds = array<i64: 3>}, {pipeline_mode = #tpu.pipeline_mode<synchronous>, transform_indices = @transform_5, window_bounds = array<i64: 1, 128>}, {transform_indices = @transform_6, window_bounds = array<i64: 1>}, {pipeline_mode = #tpu.pipeline_mode<synchronous>, transform_indices = @transform_7, window_bounds = array<i64: 384, 384>}, {pipeline_mode = #tpu.pipeline_mode<synchronous>, transform_indices = @transform_8, window_bounds = array<i64: 1, 384>}, {pipeline_mode = #tpu.pipeline_mode<synchronous>, transform_indices = @transform_9, window_bounds = array<i64: 128, 128>}, {pipeline_mode = #tpu.pipeline_mode<synchronous>, transform_indices = @transform_10, window_bounds = array<i64: 1, 128>}, {transform_indices = @transform_11, window_bounds = array<i64: 16, 128>}]} {
    %c0 = arith.constant 0 : index
    %c0_0 = arith.constant 0 : index
    %0 = vector.load %arg6[%c0, %c0_0] : memref<1x128xf32, #tpu.memory_space<vmem>>, vector<1x128xf32>
    %c0_1 = arith.constant 0 : index
    %1 = memref.load %arg7[%c0_1] : memref<1xf32, #tpu.memory_space<smem>>
    %c0_2 = arith.constant 0 : index
    %c0_3 = arith.constant 0 : index
    %2 = vector.load %arg1[%c0_2, %c0_3] : memref<16x128xf32, #tpu.memory_space<vmem>>, vector<16x128xf32>
    %c0_4 = arith.constant 0 : index
    %3 = memref.load %arg4[%c0_4] : memref<3xf32, #tpu.memory_space<smem>>
    %4 = vector.broadcast %3 : f32 to vector<16x128xf32>
    %5 = arith.mulf %2, %4 : vector<16x128xf32>
    %c0_5 = arith.constant 0 : index
    %6 = memref.load %arg5[%c0_5] : memref<3xf32, #tpu.memory_space<smem>>
    %7 = vector.broadcast %6 : f32 to vector<16x128xf32>
    %8 = arith.addf %5, %7 : vector<16x128xf32>
    %9 = vector.broadcast %0 : vector<1x128xf32> to vector<16x128xf32>
    %10 = arith.mulf %8, %9 : vector<16x128xf32>
    %cst = arith.constant dense<0.000000e+00> : vector<16xf32>
    %11 = vector.multi_reduction <add>, %10, %cst [1] : vector<16x128xf32> to vector<16xf32>
    %12 = vector.shape_cast %11 : vector<16xf32> to vector<16x1xf32>
    %13 = vector.broadcast %1 : f32 to vector<16x1xf32>
    %14 = arith.addf %12, %13 : vector<16x1xf32>
    %c0_6 = arith.constant 0 : index
    %c0_7 = arith.constant 0 : index
    %15 = vector.load %arg2[%c0_6, %c0_7] : memref<16x128xf32, #tpu.memory_space<vmem>>, vector<16x128xf32>
    %c1 = arith.constant 1 : index
    %16 = memref.load %arg4[%c1] : memref<3xf32, #tpu.memory_space<smem>>
    %17 = vector.broadcast %16 : f32 to vector<16x128xf32>
    %18 = arith.mulf %15, %17 : vector<16x128xf32>
    %c1_8 = arith.constant 1 : index
    %19 = memref.load %arg5[%c1_8] : memref<3xf32, #tpu.memory_space<smem>>
    %20 = vector.broadcast %19 : f32 to vector<16x128xf32>
    %21 = arith.addf %18, %20 : vector<16x128xf32>
    %22 = vector.broadcast %0 : vector<1x128xf32> to vector<16x128xf32>
    %23 = arith.mulf %21, %22 : vector<16x128xf32>
    %cst_9 = arith.constant dense<0.000000e+00> : vector<16xf32>
    %24 = vector.multi_reduction <add>, %23, %cst_9 [1] : vector<16x128xf32> to vector<16xf32>
    %25 = vector.shape_cast %24 : vector<16xf32> to vector<16x1xf32>
    %26 = vector.broadcast %1 : f32 to vector<16x1xf32>
    %27 = arith.addf %25, %26 : vector<16x1xf32>
    %c0_10 = arith.constant 0 : index
    %c0_11 = arith.constant 0 : index
    %28 = vector.load %arg3[%c0_10, %c0_11] : memref<16x128xf32, #tpu.memory_space<vmem>>, vector<16x128xf32>
    %c2 = arith.constant 2 : index
    %29 = memref.load %arg4[%c2] : memref<3xf32, #tpu.memory_space<smem>>
    %30 = vector.broadcast %29 : f32 to vector<16x128xf32>
    %31 = arith.mulf %28, %30 : vector<16x128xf32>
    %c2_12 = arith.constant 2 : index
    %32 = memref.load %arg5[%c2_12] : memref<3xf32, #tpu.memory_space<smem>>
    %33 = vector.broadcast %32 : f32 to vector<16x128xf32>
    %34 = arith.addf %31, %33 : vector<16x128xf32>
    %35 = vector.broadcast %0 : vector<1x128xf32> to vector<16x128xf32>
    %36 = arith.mulf %34, %35 : vector<16x128xf32>
    %cst_13 = arith.constant dense<0.000000e+00> : vector<16xf32>
    %37 = vector.multi_reduction <add>, %36, %cst_13 [1] : vector<16x128xf32> to vector<16xf32>
    %38 = vector.shape_cast %37 : vector<16xf32> to vector<16x1xf32>
    %39 = vector.broadcast %1 : f32 to vector<16x1xf32>
    %40 = arith.addf %38, %39 : vector<16x1xf32>
    %41 = arith.maximumf %14, %27 : vector<16x1xf32>
    %42 = arith.maximumf %41, %40 : vector<16x1xf32>
    %43 = arith.subf %14, %42 : vector<16x1xf32>
    %44 = math.exp %43 : vector<16x1xf32>
    %45 = arith.subf %27, %42 : vector<16x1xf32>
    %46 = math.exp %45 : vector<16x1xf32>
    %47 = arith.subf %40, %42 : vector<16x1xf32>
    %48 = math.exp %47 : vector<16x1xf32>
    %49 = arith.addf %44, %46 : vector<16x1xf32>
    %50 = arith.addf %49, %48 : vector<16x1xf32>
    %51 = tpu.reciprocal %50 : vector<16x1xf32> -> vector<16x1xf32>
    %52 = arith.mulf %44, %51 : vector<16x1xf32>
    %cst_14 = arith.constant 1.000000e+00 : f32
    %53 = vector.broadcast %cst_14 : f32 to vector<16x1xf32>
    %54 = arith.addf %53, %52 : vector<16x1xf32>
    %55 = vector.broadcast %54 : vector<16x1xf32> to vector<16x128xf32>
    %56 = arith.mulf %8, %55 : vector<16x128xf32>
    %57 = arith.truncf %56 : vector<16x128xf32> to vector<16x128xbf16>
    %58 = arith.mulf %46, %51 : vector<16x1xf32>
    %cst_15 = arith.constant 1.000000e+00 : f32
    %59 = vector.broadcast %cst_15 : f32 to vector<16x1xf32>
    %60 = arith.addf %59, %58 : vector<16x1xf32>
    %61 = vector.broadcast %60 : vector<16x1xf32> to vector<16x128xf32>
    %62 = arith.mulf %21, %61 : vector<16x128xf32>
    %63 = arith.truncf %62 : vector<16x128xf32> to vector<16x128xbf16>
    %64 = arith.mulf %48, %51 : vector<16x1xf32>
    %cst_16 = arith.constant 1.000000e+00 : f32
    %65 = vector.broadcast %cst_16 : f32 to vector<16x1xf32>
    %66 = arith.addf %65, %64 : vector<16x1xf32>
    %67 = vector.broadcast %66 : vector<16x1xf32> to vector<16x128xf32>
    %68 = arith.mulf %34, %67 : vector<16x128xf32>
    %69 = arith.truncf %68 : vector<16x128xf32> to vector<16x128xbf16>
    %70 = tpu.concatenate %57, %63, %69 in 1 : vector<16x128xbf16>, vector<16x128xbf16>, vector<16x128xbf16> -> vector<16x384xbf16>
    %c0_17 = arith.constant 0 : index
    %c0_18 = arith.constant 0 : index
    %71 = vector.load %arg8[%c0_17, %c0_18] : memref<384x384xbf16, #tpu.memory_space<vmem>>, vector<384x384xbf16>
    %cst_19 = arith.constant dense<0.000000e+00> : vector<16x384xf32>
    %72 = tpu.matmul %70, %71, %cst_19 {dimension_numbers = #tpu.dot_dimension_numbers<[1], [0], [0], [1], [0, 0, 1, 1], [], []>} : vector<16x384xbf16>, vector<384x384xbf16>, vector<16x384xf32> -> vector<16x384xf32>
    %c0_20 = arith.constant 0 : index
    %c0_21 = arith.constant 0 : index
    %73 = vector.load %arg9[%c0_20, %c0_21] : memref<1x384xf32, #tpu.memory_space<vmem>>, vector<1x384xf32>
    %74 = vector.broadcast %73 : vector<1x384xf32> to vector<16x384xf32>
    %75 = arith.addf %72, %74 : vector<16x384xf32>
    %cst_22 = arith.constant 0.000000e+00 : f32
    %76 = vector.broadcast %cst_22 : f32 to vector<16x384xf32>
    %77 = arith.cmpf ogt, %75, %76 : vector<16x384xf32>
    %cst_23 = arith.constant 1.000000e-01 : f32
    %78 = vector.broadcast %cst_23 : f32 to vector<16x384xf32>
    %79 = arith.mulf %78, %75 : vector<16x384xf32>
    %80 = arith.select %77, %75, %79 : vector<16x384xi1>, vector<16x384xf32>
    %81 = vector.extract_strided_slice %80 {offsets = [0, 0], sizes = [16, 128], strides = [1, 1]} : vector<16x384xf32> to vector<16x128xf32>
    %82 = vector.extract_strided_slice %80 {offsets = [0, 128], sizes = [16, 128], strides = [1, 1]} : vector<16x384xf32> to vector<16x128xf32>
    %83 = arith.addf %81, %82 : vector<16x128xf32>
    %84 = vector.extract_strided_slice %80 {offsets = [0, 256], sizes = [16, 128], strides = [1, 1]} : vector<16x384xf32> to vector<16x128xf32>
    %85 = arith.addf %83, %84 : vector<16x128xf32>
    %86 = arith.truncf %85 : vector<16x128xf32> to vector<16x128xbf16>
    %c0_24 = arith.constant 0 : index
    %c0_25 = arith.constant 0 : index
    %87 = vector.load %arg10[%c0_24, %c0_25] : memref<128x128xbf16, #tpu.memory_space<vmem>>, vector<128x128xbf16>
    %cst_26 = arith.constant dense<0.000000e+00> : vector<16x128xf32>
    %88 = tpu.matmul %86, %87, %cst_26 {dimension_numbers = #tpu.dot_dimension_numbers<[1], [0], [0], [1], [0, 0, 1, 1], [], []>} : vector<16x128xbf16>, vector<128x128xbf16>, vector<16x128xf32> -> vector<16x128xf32>
    %c0_27 = arith.constant 0 : index
    %c0_28 = arith.constant 0 : index
    %89 = vector.load %arg11[%c0_27, %c0_28] : memref<1x128xf32, #tpu.memory_space<vmem>>, vector<1x128xf32>
    %90 = vector.broadcast %89 : vector<1x128xf32> to vector<16x128xf32>
    %91 = arith.addf %88, %90 : vector<16x128xf32>
    %c0_29 = arith.constant 0 : index
    %c0_30 = arith.constant 0 : index
    %92 = vector.load %arg12[%c0_29, %c0_30] : memref<16x128xf32, #tpu.memory_space<vmem>>, vector<16x128xf32>
    tpu.vector_store %arg12[%c0_29, %c0_30], %91 {strides = array<i32>} : memref<16x128xf32, #tpu.memory_space<vmem>>, vector<16x128xf32>,
    return
  }
  func.func @transform_0(%arg0: i32) -> (i32, i32) {
    %c0_i32 = arith.constant 0 : i32
    %c0_i32_0 = arith.constant 0 : i32
    return %arg0, %c0_i32 : i32, i32
  }
  func.func @transform_1(%arg0: i32) -> (i32, i32) {
    %c0_i32 = arith.constant 0 : i32
    %c0_i32_0 = arith.constant 0 : i32
    return %arg0, %c0_i32 : i32, i32
  }
  func.func @transform_2(%arg0: i32) -> (i32, i32) {
    %c0_i32 = arith.constant 0 : i32
    %c0_i32_0 = arith.constant 0 : i32
    return %arg0, %c0_i32 : i32, i32
  }
  func.func @transform_3(%arg0: i32) -> i32 {
    %c0_i32 = arith.constant 0 : i32
    %c0_i32_0 = arith.constant 0 : i32
    return %c0_i32 : i32
  }
  func.func @transform_4(%arg0: i32) -> i32 {
    %c0_i32 = arith.constant 0 : i32
    %c0_i32_0 = arith.constant 0 : i32
    return %c0_i32 : i32
  }
  func.func @transform_5(%arg0: i32) -> (i32, i32) {
    %c0_i32 = arith.constant 0 : i32
    %c0_i32_0 = arith.constant 0 : i32
    %c0_i32_1 = arith.constant 0 : i32
    return %c0_i32, %c0_i32_0 : i32, i32
  }
  func.func @transform_6(%arg0: i32) -> i32 {
    %c0_i32 = arith.constant 0 : i32
    %c0_i32_0 = arith.constant 0 : i32
    return %c0_i32 : i32
  }
  func.func @transform_7(%arg0: i32) -> (i32, i32) {
    %c0_i32 = arith.constant 0 : i32
    %c0_i32_0 = arith.constant 0 : i32
    %c0_i32_1 = arith.constant 0 : i32
    return %c0_i32, %c0_i32_0 : i32, i32
  }
  func.func @transform_8(%arg0: i32) -> (i32, i32) {
    %c0_i32 = arith.constant 0 : i32
    %c0_i32_0 = arith.constant 0 : i32
    %c0_i32_1 = arith.constant 0 : i32
    return %c0_i32, %c0_i32_0 : i32, i32
  }
  func.func @transform_9(%arg0: i32) -> (i32, i32) {
    %c0_i32 = arith.constant 0 : i32
    %c0_i32_0 = arith.constant 0 : i32
    %c0_i32_1 = arith.constant 0 : i32
    return %c0_i32, %c0_i32_0 : i32, i32
  }
  func.func @transform_10(%arg0: i32) -> (i32, i32) {
    %c0_i32 = arith.constant 0 : i32
    %c0_i32_0 = arith.constant 0 : i32
    %c0_i32_1 = arith.constant 0 : i32
    return %c0_i32, %c0_i32_0 : i32, i32
  }
  func.func @transform_11(%arg0: i32) -> (i32, i32) {
    %c0_i32 = arith.constant 0 : i32
    %c0_i32_0 = arith.constant 0 : i32
    return %arg0, %c0_i32 : i32, i32
  }
}

</mosaic_0001>

<bundles_post_ra>
// kernel: tpu_custom_call.1
= control target key start
LH: loop header
LB: loop body
LE: loop exit
PB: predicated region body
PF: predicated region fallthrough
CT: control target
= control target key end

     0   :  { %s2835_s0 = inlined_call_operand.hbm [shape: f32[32,128], index: 0, kind: input, shape index: {}]   ;;  %s2836_s1 = inlined_call_operand.hbm [shape: f32[32,128], index: 1, kind: input, shape index: {}]   ;;  %s2837_s2 = inlined_call_operand.hbm [shape: f32[32,128], index: 2, kind: input, shape index: {}]   ;;  %s2838_s3 = inlined_call_operand.vmem [shape: f32[3], index: 3, kind: input, shape index: {}]   ;;  %s2839_s4 = inlined_call_operand.vmem [shape: f32[3], index: 4, kind: input, shape index: {}]   ;;  %s2840_s5 = inlined_call_operand.vmem [shape: f32[1,128], index: 5, kind: input, shape index: {}]   ;;  %s2841_s6 = inlined_call_operand.<no memory space> [shape: f32[1], index: 6, kind: input, shape index: {}]   ;;  %s2842_s7 = inlined_call_operand.hbm [shape: bf16[384,384], index: 7, kind: input, shape index: {}]   ;;  %s2843_s8 = inlined_call_operand.vmem [shape: f32[1,384], index: 8, kind: input, shape index: {}]   ;;  %s2844_s9 = inlined_call_operand.hbm [shape: bf16[128,128], index: 9, kind: input, shape index: {}]   ;;  %s2845_s10 = inlined_call_operand.vmem [shape: f32[1,128], index: 10, kind: input, shape index: {}]   ;;  %s2846_s11 = inlined_call_operand.hbm [shape: f32[32,128], index: 11, kind: output, shape index: {}]  }
   0x1   :  { %2872 = sst [smem:[#allocation29_spill]] %s2842_s7 }
   0x2   :  { %2873 = sst [smem:[#allocation30_spill]] %s2845_s10 }
   0x3   :  { %2874 = sst [smem:[#allocation31_spill]] %s2846_s11 }
   0x4   :  { %16 = sst [smem:[#allocation2]] %s2841_s6 }
   0x5   :  { %17 = vsyncpa [#allocation4], 0 }
   0x6   :  { %19 = vsyncpa [#allocation4 + $0x1], 0 }
   0x7   :  { %20 = vsyncpa [#allocation8], 0 }
   0x8   :  { %22 = vsyncpa [#allocation8 + $0x1], 0 }
   0x9   :  { %23 = vsyncpa [#allocation6], 0 }
   0xa   :  { %24 = vsyncpa [#allocation12], 0 }
   0xb   :  { %25 = vsyncpa [#allocation14], 0 }
   0xc   :  { %26 = vsyncpa [#allocation5], 0 }
   0xd   :  { %28 = vsyncpa [#allocation5 + $0x1], 0  ;;  %s2407_s19 = smov 0   ;;  %s2409_s20 = smov 0  }
   0xe   :  { %s2411_s21 = smov 0   ;;  %s2413_s22 = smov 0  }
   0xf LB: > { %2875 = sst [smem:[#allocation23_spill]] %s2311_s19  ;;  %s2428_s6 = sadd.s32 4294967295, %s2323_s22   ;;  %s2323_s22 = sphi %s2413_s22, %s2915_s22   ;;  %s2319_s21 = sphi %s2411_s21, %s2919_s21   ;;  %s2315_s20 = sphi %s2409_s20, %s2918_s20   ;;  %s2311_s19 = sphi %s2407_s19, %s2917_s19  }
  0x10   : > { %2876 = sst [smem:[#allocation24_spill]] %s2323_s22  ;;  %s1629_s23 = sadd.s32 4294967294, %s2323_s22  }
  0x11   : > { %p54_p0 = scmp.ne.s32.totalorder %s2315_s20, %s2311_s19  ;;  %p2848_p1 = scmp.eq.s32.totalorder %s2428_s6, 0 }
  0x12   : > { %p304_p3 = scmp.eq.s32.totalorder %s1629_s23, 1  ;;  %p1630_p5 = scmp.ge.s32.totalorder %s2323_s22, 1 }
  0x13   : > { %p2437_p4 = por %p2848_p1, %p54_p0  ;;  %p311_p7 = scmp.lt.s32.totalorder %s2323_s22, 3 }
  0x14   : > { %p2442_p6 = por %p304_p3, %p54_p0  ;;  %s2325_s27 = smov [#allocation13]  }
  0x15   : > { %s2877_s24 = scalar_select %p2437_p4, 1, 0 }
  0x16   : > { %s2878_s25 = scalar_select %p2442_p6, 1, 0 }
  0x17   : > { %p2447_p8 = pnand %p1630_p5, %p311_p7  ;;  %s351_s28 = sshll.u32 %s2325_s27, 4  ;;  %s2451_s28 = int_to_ptr.vmem [resolvable:$true] %s351_s28 }
  0x18   : > { %2879 = sst [smem:[#allocation25_spill]] %s2878_s25  ;;  %s2463_s30 = sadd.s32 1, %s2323_s22  }
  0x19   : > { %s2880_s26 = scalar_select %p2447_p8, 1, 0 }
  0x1a   : > { %p1861_p9 = pneg %p2447_p8  ;;  %2882 = sst [smem:[#allocation26_spill]] %s2463_s30 }
  0x1b   : > { %s41_s12 = sadd.s32 1, %s2319_s21  ;;  %s38_s13 = ssub.s32 %s2323_s22, %s2463_s30 }
  0x1c   : > { %p2458_p11 = pnand %p1861_p9, %p2848_p1  ;;  %s2883_s7 = sld [smem:[#allocation29_spill]] }
  0x1e   : > { %s2881_s29 = scalar_select %p2458_p11, 1, 0 }
  0x1f   : > { %p2476_p13 = pneg %p2458_p11 }
  0x21   : > { %s2884_s23 = scalar_select %p2476_p13, 1, 0 }
  0x22   : > { %s2065_s16 = scalar_lea.hbm %s2883_s7, 9216 }
  0x23   : > { %p2066_p12 = scmp.ne.s32.totalorder %s2883_s7, %s2065_s16  ;;  %p2072_p5 = scmp.lt.u32.totalorder %s2065_s16, %s2883_s7 }
  0x25   : > { %p2068_p0 = pnand %p2476_p13, %p2066_p12 }
  0x27   : > { %p2069_p3 = pneg %p2068_p0 }
  0x29   : > { %p2074_p7 = pnand %p2072_p5, %p2069_p3 }
  0x2b   : > { %2077 = shalt.err (!%p2074_p7)
}
  0x2c   : > { %s2078_s14 = scalar_lea.vmem %s2451_s28, 9216  ;;  %p2086_p2 = scmp.lt.s32.totalorder %s2451_s28, %s2451_s28 }
  0x2d   : > { %p2079_p9 = scmp.ne.s32.totalorder %s2451_s28, %s2078_s14  ;;  %p2087_p6 = scmp.lt.s32.totalorder %s2078_s14, %s2078_s14 }
  0x2f   : > { %p2081_p10 = pnand %p2079_p9, %p2476_p13  ;;  %p2088_p12 = por %p2087_p6, %p2086_p2 }
  0x31   : > { %p2082_p1 = pneg %p2081_p10 }
  0x33   : > { %p2089_p0 = pnand %p2088_p12, %p2082_p1 }
  0x35   : > { %2092 = shalt.err (!%p2089_p0)
}
  0x36   : > { %s2326_s15 = smov 192   ;;  %s2327_s25 = smov 12  }
  0x37   : > { %1870 = dma.hbm_to_vmem [thread:$0]  (!%p2458_p11), %s2883_s7, 9216, %s2451_s28, [#allocation14], %s2326_s15, %s2326_s15, %s2327_s25  }
  0x38   : > { %p39_p1 = scmp.eq.s32.totalorder %s38_s13, 0  ;;  %p48_p2 = scmp.ne.s32.totalorder %s2319_s21, %s2315_s20 }
  0x39   : > { %p49_p6 = scmp.eq.s32.totalorder %s2323_s22, 0  ;;  %p1892_p10 = scmp.lt.s32.totalorder %s2323_s22, 2 }
  0x3a   : > { %s2502_s18 = scalar_select %p39_p1, %s2319_s21, %s41_s12  }
  0x3b   : > { %p50_p3 = por %p49_p6, %p48_p2  ;;  %p2886_p5 = scmp.eq.s32.totalorder %s2428_s6, 1 }
  0x3c   : > { %2885 = sst [smem:[#allocation27_spill]] %s2502_s18  ;;  %s2852_s14 = sand.u32 1, %s2319_s21  }
  0x3d   : > { %p2506_p7 = por %p2886_p5, %p48_p2  ;;  %s2512_s30 = sshll.u32 %s2323_s22, 8 }
  0x3e   : > { %s2516_s19 = sshll.u32 %s2852_s14, 4  ;;  %p2518_p9 = pnand %p1892_p10, %p50_p3 }
  0x3f   : > { %s2887_s27 = scalar_select %p2506_p7, 1, 0 }
  0x40   : > { %s2889_s28 = scalar_select %p2518_p9, 1, 0 }
  0x41   : > { %2888 = sst [smem:[#allocation28_spill]] %s2887_s27  ;;  %s405_s12 = sand.u32 1, %s2323_s22  }
  0x42   : > { %s2527_s25 = scalar_lea.hbm %s2836_s1, %s2512_s30  ;;  %s409_s16 = scalar_lea.vmem [#allocation7], %s2516_s19 }
  0x43   : > { %s416_s17 = sshll.u32 %s409_s16, 4  ;;  %s324_s18 = sshll.u32 %s2838_s3, 4  ;;  %s2530_s17 = int_to_ptr.vmem [resolvable:$true] %s416_s17  ;;  %s325_s18 = int_to_ptr.vmem [resolvable:$true] %s324_s18 }
  0x44   : > { %s2535_s11 = scalar_lea.sflag [#allocation8], %s405_s12  ;;  %s2093_s22 = scalar_lea.hbm %s2527_s25, 256 }
  0x45   : > { %p2094_p12 = scmp.ne.s32.totalorder %s2527_s25, %s2093_s22  ;;  %p2541_p0 = pneg %p2518_p9 }
  0x46   : > { %s2098_s27 = scalar_lea.hbm %s2836_s1, 512  ;;  %p2099_p6 = scmp.lt.u32.totalorder %s2527_s25, %s2836_s1 }
  0x47   : > { %s2890_s13 = scalar_select %p2541_p0, 1, 0 }
  0x48   : > { %p2096_p1 = pnand %p2541_p0, %p2094_p12  ;;  %p2100_p10 = scmp.lt.u32.totalorder %s2098_s27, %s2093_s22 }
  0x49   : > { %p2102_p5 = scmp.lt.u32.totalorder %s2093_s22, %s2527_s25 }
  0x4a   : > { %p2097_p2 = pneg %p2096_p1  ;;  %p2101_p3 = por %p2100_p10, %p2099_p6 }
  0x4c   : > { %p2103_p7 = por %p2102_p5, %p2101_p3 }
  0x4e   : > { %p2104_p4 = pnand %p2103_p7, %p2097_p2 }
  0x50   : > { %2107 = shalt.err (!%p2104_p4)
}
  0x51   : > { %s2108_s14 = scalar_lea.vmem %s2530_s17, 256  ;;  %s2328_s12 = smov [#allocation7]  }
  0x52   : > { %p2109_p12 = scmp.ne.s32.totalorder %s2530_s17, %s2108_s14  ;;  %s2113_s15 = sshll.u32 %s2328_s12, 4  ;;  %s2114_s15 = int_to_ptr.vmem [resolvable:$false] %s2113_s15 }
  0x53   : > { %s2115_s10 = scalar_lea.vmem %s2114_s15, 512  ;;  %p2116_p11 = scmp.lt.s32.totalorder %s2530_s17, %s2114_s15 }
  0x54   : > { %p2111_p1 = pnand %p2109_p12, %p2541_p0  ;;  %p2117_p13 = scmp.lt.s32.totalorder %s2115_s10, %s2108_s14 }
  0x56   : > { %p2112_p8 = pneg %p2111_p1  ;;  %p2118_p6 = por %p2117_p13, %p2116_p11 }
  0x58   : > { %p2119_p10 = pnand %p2118_p6, %p2112_p8 }
  0x5a   : > { %2122 = shalt.err (!%p2119_p10)
}
  0x5b   : > { %s2864_s22 = smov 128   ;;  %s2866_s27 = smov 8  }
  0x5c   : > { %1880 = dma.hbm_to_vmem [thread:$0]  (!%p2518_p9), %s2527_s25, 256, %s2530_s17, %s2535_s11, %s2864_s22, %s2864_s22, %s2866_s27  }
  0x5d   : > { %s2123_s14 = scalar_lea.vmem %s325_s18, 16  ;;  %p2891_p8 = scmp.ne.s32.totalorder %s2884_s23, 0 }
  0x5e   : > { %p2124_p4 = scmp.ne.s32.totalorder %s325_s18, %s2123_s14  ;;  %p2131_p7 = scmp.lt.s32.totalorder %s325_s18, %s325_s18 }
  0x5f   : > { %p2132_p2 = scmp.lt.s32.totalorder %s2123_s14, %s2123_s14 }
  0x60   : > { %p2126_p11 = pnand %p2124_p4, %p2891_p8 }
  0x61   : > { %p2133_p3 = por %p2132_p2, %p2131_p7 }
  0x62   : > { %p2127_p13 = pneg %p2126_p11 }
  0x64   : > { %p2134_p5 = pnand %p2133_p3, %p2127_p13 }
  0x66   : > { %2137 = shalt.err (!%p2134_p5)
}
  0x67   : > { %s2331_s12 = smov [#allocation10]   ;;  %p2892_p12 = scmp.ne.s32.totalorder %s2881_s29, 0 }
  0x68   : > { %s335_s15 = sshll.u32 %s2839_s4, 4  ;;  %s336_s15 = int_to_ptr.vmem [resolvable:$true] %s335_s15 }
  0x69   : > { %1864 = dma.vmem_to_smem (!%p2892_p12), %s325_s18, 16, %s2331_s12, [#allocation6]  }
  0x6a   : > { %s2138_s10 = scalar_lea.vmem %s336_s15, 16  ;;  %p2146_p4 = scmp.lt.s32.totalorder %s336_s15, %s336_s15 }
  0x6b   : > { %p2139_p1 = scmp.ne.s32.totalorder %s336_s15, %s2138_s10  ;;  %p2147_p11 = scmp.lt.s32.totalorder %s2138_s10, %s2138_s10 }
  0x6d   : > { %p2141_p6 = pnand %p2139_p1, %p2891_p8  ;;  %p2148_p7 = por %p2147_p11, %p2146_p4 }
  0x6f   : > { %p2142_p10 = pneg %p2141_p6 }
  0x71   : > { %p2149_p13 = pnand %p2148_p7, %p2142_p10 }
  0x73   : > { %2152 = shalt.err (!%p2149_p13)
}
  0x74   : > { %s2332_s16 = smov [#allocation11]   ;;  %s2333_s18 = smov [#allocation15]  }
  0x75   : > { %1867 = dma.vmem_to_smem (!%p2892_p12), %s336_s15, 16, %s2332_s16, [#allocation12]  }
  0x76   : > { %s367_s7 = sshll.u32 %s2333_s18, 4  ;;  %s2153_s25 = scalar_lea.hbm %s2844_s9, 1024  ;;  %s368_s7 = int_to_ptr.vmem [resolvable:$true] %s367_s7 }
  0x77   : > { %p2154_p2 = scmp.ne.s32.totalorder %s2844_s9, %s2153_s25  ;;  %p2160_p1 = scmp.lt.u32.totalorder %s2153_s25, %s2844_s9 }
  0x79   : > { %p2156_p3 = pnand %p2154_p2, %p2891_p8 }
  0x7b   : > { %p2157_p5 = pneg %p2156_p3 }
  0x7d   : > { %p2162_p6 = pnand %p2160_p1, %p2157_p5 }
  0x7f   : > { %2165 = shalt.err (!%p2162_p6)
}
  0x80   : > { %s2166_s15 = scalar_lea.vmem %s368_s7, 1024  ;;  %p2174_p7 = scmp.lt.s32.totalorder %s368_s7, %s368_s7 }
  0x81   : > { %p2167_p10 = scmp.ne.s32.totalorder %s368_s7, %s2166_s15  ;;  %p2175_p13 = scmp.lt.s32.totalorder %s2166_s15, %s2166_s15 }
  0x83   : > { %p2169_p4 = pnand %p2167_p10, %p2891_p8  ;;  %p2176_p9 = por %p2175_p13, %p2174_p7 }
  0x85   : > { %p2170_p11 = pneg %p2169_p4 }
  0x87   : > { %p2177_p0 = pnand %p2176_p9, %p2170_p11 }
  0x89   : > { %2180 = shalt.err (!%p2177_p0)
}
  0x8a   : > { %s2334_s22 = smov 64   ;;  %s2335_s27 = smov 4  }
  0x8b   : > { %1873 = dma.hbm_to_vmem [thread:$0]  (!%p2892_p12), %s2844_s9, 1024, %s368_s7, [#allocation14], %s2334_s22, %s2334_s22, %s2335_s27  }
  0x8c   : > { %s2605_s12 = scalar_lea.hbm %s2835_s0, %s2512_s30  ;;  %s388_s25 = scalar_lea.vmem [#allocation3], %s2516_s19 }
  0x8d   : > { %s395_s17 = sshll.u32 %s388_s25, 4  ;;  %s2893_s10 = sand.u32 1, %s2319_s21   ;;  %s2608_s17 = int_to_ptr.vmem [resolvable:$true] %s395_s17 }
  0x8e   : > { %s2612_s15 = scalar_lea.sflag [#allocation4], %s2893_s10  ;;  %s2181_s29 = scalar_lea.hbm %s2605_s12, 256 }
  0x8f   : > { %p2182_p9 = scmp.ne.s32.totalorder %s2605_s12, %s2181_s29  ;;  %p2894_p0 = scmp.ne.s32.totalorder %s2890_s13, 0 }
  0x90   : > { %s2186_s27 = scalar_lea.hbm %s2835_s0, 512  ;;  %p2187_p2 = scmp.lt.u32.totalorder %s2605_s12, %s2835_s0 }
  0x91   : > { %p2184_p8 = pnand %p2182_p9, %p2894_p0  ;;  %p2188_p3 = scmp.lt.u32.totalorder %s2186_s27, %s2181_s29 }
  0x92   : > { %p2190_p1 = scmp.lt.u32.totalorder %s2181_s29, %s2605_s12 }
  0x93   : > { %p2185_p12 = pneg %p2184_p8  ;;  %p2189_p5 = por %p2188_p3, %p2187_p2 }
  0x95   : > { %p2191_p6 = por %p2190_p1, %p2189_p5 }
  0x97   : > { %p2192_p10 = pnand %p2191_p6, %p2185_p12 }
  0x99   : > { %2195 = shalt.err (!%p2192_p10)
}
  0x9a   : > { %s2196_s23 = scalar_lea.vmem %s2608_s17, 256  ;;  %s2336_s14 = smov [#allocation3]  }
  0x9b   : > { %p2197_p4 = scmp.ne.s32.totalorder %s2608_s17, %s2196_s23  ;;  %s2201_s25 = sshll.u32 %s2336_s14, 4  ;;  %s2202_s25 = int_to_ptr.vmem [resolvable:$false] %s2201_s25 }
  0x9c   : > { %s2203_s10 = scalar_lea.vmem %s2202_s25, 512  ;;  %p2204_p13 = scmp.lt.s32.totalorder %s2608_s17, %s2202_s25 }
  0x9d   : > { %p2199_p11 = pnand %p2197_p4, %p2894_p0  ;;  %p2205_p9 = scmp.lt.s32.totalorder %s2203_s10, %s2196_s23 }
  0x9f   : > { %p2200_p7 = pneg %p2199_p11  ;;  %p2206_p8 = por %p2205_p9, %p2204_p13 }
  0xa1   : > { %p2207_p2 = pnand %p2206_p8, %p2200_p7 }
  0xa3   : > { %2210 = shalt.err (!%p2207_p2)
}
  0xa4   : > { %p2895_p12 = scmp.ne.s32.totalorder %s2889_s28, 0  ;;  %s2896_s29 = smov 8  }
  0xa5   : > { %s2897_s7 = smov 128   ;;  %s2643_s16 = scalar_lea.hbm %s2837_s2, %s2512_s30 }
  0xa6   : > { %1877 = dma.hbm_to_vmem [thread:$0]  (!%p2895_p12), %s2605_s12, 256, %s2608_s17, %s2612_s15, %s2897_s7, %s2897_s7, %s2896_s29  }
  0xa7   : > { %s430_s18 = scalar_lea.vmem [#allocation9], %s2516_s19  ;;  %s2211_s14 = scalar_lea.hbm %s2643_s16, 256 }
  0xa8   : > { %s437_s23 = sshll.u32 %s430_s18, 4  ;;  %p2212_p3 = scmp.ne.s32.totalorder %s2643_s16, %s2211_s14  ;;  %s2646_s23 = int_to_ptr.vmem [resolvable:$true] %s437_s23 }
  0xa9   : > { %s2216_s17 = scalar_lea.hbm %s2837_s2, 512  ;;  %p2217_p6 = scmp.lt.u32.totalorder %s2643_s16, %s2837_s2 }
  0xaa   : > { %p2214_p5 = pnand %p2212_p3, %p2894_p0  ;;  %p2218_p10 = scmp.lt.u32.totalorder %s2216_s17, %s2211_s14 }
  0xab   : > { %p2220_p11 = scmp.lt.u32.totalorder %s2211_s14, %s2643_s16 }
  0xac   : > { %p2215_p1 = pneg %p2214_p5  ;;  %p2219_p4 = por %p2218_p10, %p2217_p6 }
  0xae   : > { %p2221_p7 = por %p2220_p11, %p2219_p4 }
  0xb0   : > { %p2222_p13 = pnand %p2221_p7, %p2215_p1 }
  0xb2   : > { %2225 = shalt.err (!%p2222_p13)
}
  0xb3   : > { %s2226_s19 = scalar_lea.vmem %s2646_s23, 256  ;;  %s2337_s10 = smov [#allocation9]  }
  0xb4   : > { %p2227_p9 = scmp.ne.s32.totalorder %s2646_s23, %s2226_s19  ;;  %s2231_s22 = sshll.u32 %s2337_s10, 4  ;;  %s2232_s22 = int_to_ptr.vmem [resolvable:$false] %s2231_s22 }
  0xb5   : > { %s2233_s27 = scalar_lea.vmem %s2232_s22, 512  ;;  %p2234_p3 = scmp.lt.s32.totalorder %s2646_s23, %s2232_s22 }
  0xb6   : > { %p2229_p8 = pnand %p2227_p9, %p2894_p0  ;;  %p2235_p5 = scmp.lt.s32.totalorder %s2233_s27, %s2226_s19 }
  0xb8   : > { %p2230_p2 = pneg %p2229_p8  ;;  %p2236_p6 = por %p2235_p5, %p2234_p3 }
  0xba   : > { %p2237_p10 = pnand %p2236_p6, %p2230_p2 }
  0xbc   : > { %2240 = shalt.err (!%p2237_p10)
}
  0xbd   : > { %1883 = dma.hbm_to_vmem [thread:$0]  (!%p2895_p12), %s2643_s16, 256, %s2646_s23, %s2535_s11, %s2897_s7, %s2897_s7, %s2896_s29  }
  0xbe   : > { %p2898_p0 = scmp.ne.s32.totalorder %s2880_s26, 0 }
  0xbf   : > { %s2676_s13 = sand.u32 (!%p2898_p0), 1, %s2315_s20   ;;  %p2899_p1 = scmp.ne.s32.totalorder (!%p2898_p0), %s2877_s24, 0 }
  0xc0   : > { %449 = sbr.rel (%p2898_p0) target bundleno = 915 (0x393), region = 64  ;;  %s2679_s18 = sshll.u32 (!%p2898_p0), %s2676_s13, 4 }
  0xc1   : > { %s452_s28 = scalar_lea.sflag (!%p2898_p0), [#allocation4], %s2676_s13  ;;  %s455_s14 = scalar_lea.vmem (!%p2898_p0), [#allocation3], %s2679_s18 }
  0xc7   : > { %2286 = dma.done.wait (%p2899_p1), %s452_s28, 256  }
  0xc8   : > { %2288 = vsyncadd (%p2899_p1), %s452_s28, 4294967040  ;;  %s460_s11 = sand.u32 1, %s2428_s6   ;;  %s464_s29 = scalar_lea.vmem [#allocation7], %s2679_s18 }
  0xc9   : > { %s461_s26 = scalar_lea.sflag [#allocation8], %s460_s11 }
  0xca   : > { %2290 = dma.done.wait (%p2899_p1), %s461_s26, 512  }
  0xcb   : > { %2292 = vsyncadd (%p2899_p1), %s461_s26, 4294966784  ;;  %s473_s7 = scalar_lea.vmem [#allocation9], %s2679_s18  ;;  %p2900_p12 = scmp.eq.s32.totalorder %s2428_s6, 0 }
  0xcd   : > { %2294 = dma.done.wait (%p2900_p12), [#allocation6], 16   ;;  %p2901_p4 = pmov %p2900_p12 }
  0xcf   : > { %2296 = vsyncadd (%p2901_p4), [#allocation6], 4294967280  ;;  %p2902_p11 = pmov %p2901_p4 }
  0xd0   : > { %p2903_p7 = pmov %p2901_p4 }
  0xd1   : > { %2298 = dma.done.wait (%p2902_p11), [#allocation12], 16  }
  0xd2   : > { %2300 = vsyncadd (%p2903_p7), [#allocation12], 4294967280  ;;  %p2904_p13 = pmov %p2901_p4 }
  0xd3   : > { %p2905_p9 = pmov %p2901_p4 }
  0xd4   : > { %2302 = dma.done.wait (%p2904_p13), [#allocation14], 10240  }
  0xd5   : > { %2304 = vsyncadd (%p2905_p9), [#allocation14], 4294957056 }
  0xd6   : > { %494 = sfence }
  0xd7   : > { %s1655_s24 = sld [smem:[#allocation10 + $0x1]]  ;;  %s548_s23 = sld [smem:[#allocation10]]  ;;  %v571_v0 = vld [vmem:[%s464_s29] sm:$0xff]  ;;  %v572_v1 = vld [vmem:[%s464_s29 + $0x8] sm:$0xff]  ;;  %vm2340_vm0 = vmmov 0  }
  0xd8   : > { %s2706_s16 = sld [smem:[#allocation11 + $0x1]]  ;;  %s2708_s25 = sld [smem:[#allocation11]]  ;;  %v546_v2 = vld [vmem:[%s455_s14] sm:$0xff]  ;;  %v547_v3 = vld [vmem:[%s455_s14 + $0x8] sm:$0xff] }
  0xd9   : > { %s2710_s12 = sld [smem:[#allocation10 + $0x2]]  ;;  %v1945_v4 = vld [vmem:[#allocation13 + $0x4] ss:$12 sps:$4 sm:$0xff]   ;;  %v1947_v5 = vld [vmem:[#allocation13] ss:$12 sps:$4 sm:$0xff]   ;;  %s545_s19 = sld [smem:[#allocation2]] }
  0xda   : > { %s2712_s17 = sld [smem:[#allocation11 + $0x2]]  ;;  %v590_v6 = vld [vmem:[%s473_s7 + $0x8] sm:$0xff]  ;;  %1153 = vmatprep.subr.bf16.mxu0 %v1945_v4  ;;  %v1654_v8 = vld [vmem:[%s2840_s5] ss:$0 sm:$0xff]  ;;  %v1957_v39 = vld [vmem:[#allocation13 + $0x64] ss:$12 sps:$4 sm:$0xff]  }
  0xdb   : > { %v1948_v7 = vld [vmem:[#allocation13 + $0x1c] ss:$12 sps:$4 sm:$0xff]   ;;  %v589_v10 = vld [vmem:[%s473_s7] sm:$0xff]  ;;  %1154 = vmatpush1.bf16.msra.mxu0 %v1947_v5  ;;  %v1954_v25 = vld [vmem:[#allocation13 + $0x4c] ss:$12 sps:$4 sm:$0xff]   ;;  %s2906_s14 = sld [smem:[#allocation30_spill]] }
  0xdc   : > { %v1950_v11 = vld [vmem:[#allocation13 + $0x18] ss:$12 sps:$4 sm:$0xff]   ;;  %1155 = vmatprep.subr.bf16.mxu0 %v1948_v7  ;;  %v1951_v16 = vld [vmem:[#allocation13 + $0x34] ss:$12 sps:$4 sm:$0xff]   ;;  %v1953_v21 = vld [vmem:[#allocation13 + $0x30] ss:$12 sps:$4 sm:$0xff]  }
  0xdd   : > { %v574_v9 = vstv %s1655_s24  ;;  %v549_v14 = vstv %s548_s23  ;;  %v1956_v32 = vld [vmem:[#allocation13 + $0x48] ss:$12 sps:$4 sm:$0xff]   ;;  %v1959_v40 = vld [vmem:[#allocation13 + $0x60] ss:$12 sps:$4 sm:$0xff]   ;;  %v1962_v42 = vld [vmem:[#allocation13 + $0x78] ss:$12 sps:$4 sm:$0xff]  }
  0xde   : > { %v575_v12 = vmul.f32 %v574_v9, %v571_v0  ;;  %v578_v13 = vstv %s2706_s16  ;;  %v576_v15 = vmul.f32 %v574_v9, %v572_v1  ;;  %v550_v17 = vmul.f32 %v549_v14, %v546_v2  ;;  %v1960_v41 = vld [vmem:[#allocation13 + $0x7c] ss:$12 sps:$4 sm:$0xff]   ;;  %v1963_v43 = vld [vmem:[#allocation13 + $0x94] ss:$12 sps:$4 sm:$0xff]   ;;  %v1966_v45 = vld [vmem:[#allocation13 + $0xac] ss:$12 sps:$4 sm:$0xff]  }
  0xdf   : > { %v553_v18 = vstv %s2708_s25  ;;  %v551_v19 = vmul.f32 %v549_v14, %v547_v3  ;;  %v592_v20 = vstv %s2710_s12  ;;  %1156 = vmatpush1.bf16.msra.mxu0 %v1950_v11  ;;  %v1965_v44 = vld [vmem:[#allocation13 + $0x90] ss:$12 sps:$4 sm:$0xff]   ;;  %v1968_v46 = vld [vmem:[#allocation13 + $0xa8] ss:$12 sps:$4 sm:$0xff]   ;;  %v1972_v49 = vld [vmem:[#allocation13 + $0xc0] ss:$12 sps:$4 sm:$0xff]  }
  0xe0   : > { %v2720_v22 = vadd.f32 %v578_v13, %v575_v12  ;;  %v2722_v23 = vadd.f32 %v578_v13, %v576_v15  ;;  %v594_v24 = vmul.f32 %v592_v20, %v590_v6  ;;  %v2724_v26 = vadd.f32 %v553_v18, %v550_v17  ;;  %1157 = vmatprep.subr.bf16.mxu0 %v1951_v16  ;;  %v1969_v47 = vld [vmem:[#allocation13 + $0xc4] ss:$12 sps:$4 sm:$0xff]   ;;  %v1971_v48 = vld [vmem:[#allocation13 + $0xc8] ss:$12 sps:$4 sm:$0xff]   ;;  %v1976_v52 = vld [vmem:[#allocation13 + $0xe0] ss:$12 sps:$4 sm:$0xff]  }
  0xe1   : > { %v2726_v27 = vadd.f32 %v553_v18, %v551_v19  ;;  %v596_v28 = vstv %s2712_s17  ;;  %v593_v29 = vmul.f32 %v592_v20, %v589_v10  ;;  %v1973_v50 = vld [vmem:[#allocation13 + $0x8] ss:$12 sps:$4 sm:$0xff]   ;;  %1749 = vmatprep.subr.bf16.mxu1 %v1971_v48  ;;  %v1977_v53 = vld [vmem:[#allocation13 + $0xd8] ss:$12 sps:$4 sm:$0xff]   ;;  %v1978_v54 = vld [vmem:[#allocation13 + $0x20] ss:$12 sps:$4 sm:$0xff]   ;;  %v568_v19 = vstv %s545_s19 }
  0xe2   : > { %v581_v30 = vmul.f32 %v1654_v8, %v2720_v22  ;;  %v562_v31 = vmul.f32 %v1654_v8, %v2724_v26  ;;  %v582_v33 = vmul.f32 %v1654_v8, %v2722_v23  ;;  %v2732_v34 = vadd.f32 %v596_v28, %v594_v24  ;;  %1750 = vmatpush3.bf16.msra.mxu1 %v1973_v50  ;;  %v1974_v51 = vld [vmem:[#allocation13 + $0xdc] ss:$12 sps:$4 sm:$0xff]   ;;  %v1979_v55 = vld [vmem:[#allocation13 + $0xf4] ss:$12 sps:$4 sm:$0xff]   ;;  %v1981_v56 = vld [vmem:[#allocation13 + $0xf8] ss:$12 sps:$4 sm:$0xff]  }
  0xe3   : > { %v563_v35 = vmul.f32 %v1654_v8, %v2726_v27  ;;  %v2735_v36 = vadd.f32 %v596_v28, %v593_v29  ;;  %1158 = vmatpush1.bf16.msra.mxu0 %v1953_v21  ;;  %1751 = vmatprep.subr.bf16.mxu1 %v1976_v52  ;;  %v1982_v57 = vld [vmem:[#allocation13 + $0xf0] ss:$12 sps:$4 sm:$0xff]   ;;  %v1983_v58 = vld [vmem:[#allocation13 + $0x38] ss:$12 sps:$4 sm:$0xff]   ;;  %v1987_v61 = vld [vmem:[#allocation13 + $0x108] ss:$12 sps:$4 sm:$0xff]  }
  0xe4   : > { %583 = vadd.xlane.f32.xlu1 %v581_v30  ;;  %564 = vadd.xlane.f32.xlu0 %v562_v31  ;;  %v600_v37 = vmul.f32 %v1654_v8, %v2732_v34  ;;  %v1984_v59 = vld [vmem:[#allocation13 + $0x10c] ss:$12 sps:$4 sm:$0xff]   ;;  %v1986_v60 = vld [vmem:[#allocation13 + $0x110] ss:$12 sps:$4 sm:$0xff]   ;;  %v1991_v0 = vld [vmem:[#allocation13 + $0x128] ss:$12 sps:$4 sm:$0xff]  }
  0xe5   : > { %1159 = vmatprep.subr.bf16.mxu0 %v1954_v25  ;;  %v599_v38 = vmul.f32 %v1654_v8, %v2735_v36  ;;  %v1988_v62 = vld [vmem:[#allocation13 + $0x50] ss:$12 sps:$4 sm:$0xff]   ;;  %v1992_v1 = vld [vmem:[#allocation13 + $0x120] ss:$12 sps:$4 sm:$0xff]   ;;  %v1993_v2 = vld [vmem:[#allocation13 + $0x68] ss:$12 sps:$4 sm:$0xff]  }
  0xe6   : > { %1752 = vmatpush3.bf16.msra.mxu1 %v1978_v54  ;;  %v1989_v63 = vld [vmem:[#allocation13 + $0x124] ss:$12 sps:$4 sm:$0xff]   ;;  %v1994_v3 = vld [vmem:[#allocation13 + $0x13c] ss:$12 sps:$4 sm:$0xff]   ;;  %v1996_v4 = vld [vmem:[#allocation13 + $0x140] ss:$12 sps:$4 sm:$0xff]  }
  0xe7   : > { %1160 = vmatpush1.bf16.msra.mxu0 %v1956_v32  ;;  %1753 = vmatprep.subr.bf16.mxu1 %v1981_v56  ;;  %v1997_v5 = vld [vmem:[#allocation13 + $0x138] ss:$12 sps:$4 sm:$0xff]   ;;  %v1998_v6 = vld [vmem:[#allocation13 + $0x80] ss:$12 sps:$4 sm:$0xff]   ;;  %v2002_v9 = vld [vmem:[#allocation13 + $0x150] ss:$12 sps:$4 sm:$0xff]  }
  0xe8   : > { %585 = vadd.xlane.f32.xlu1 %v582_v33  ;;  %566 = vadd.xlane.f32.xlu0 %v563_v35  ;;  %v1999_v7 = vld [vmem:[#allocation13 + $0x154] ss:$12 sps:$4 sm:$0xff]   ;;  %v2001_v8 = vld [vmem:[#allocation13 + $0x158] ss:$12 sps:$4 sm:$0xff]   ;;  %v2006_v12 = vld [vmem:[#allocation13 + $0x170] ss:$12 sps:$4 sm:$0xff]  }
  0xe9   : > { %1161 = vmatprep.subr.bf16.mxu0 %v1957_v39  ;;  %v2003_v10 = vld [vmem:[#allocation13 + $0x98] ss:$12 sps:$4 sm:$0xff]   ;;  %v2007_v13 = vld [vmem:[#allocation13 + $0x168] ss:$12 sps:$4 sm:$0xff]   ;;  %v2008_v14 = vld [vmem:[#allocation13 + $0xb0] ss:$12 sps:$4 sm:$0xff]  }
  0xea   : > { %1754 = vmatpush3.bf16.msra.mxu1 %v1983_v58  ;;  %v2004_v11 = vld [vmem:[#allocation13 + $0x16c] ss:$12 sps:$4 sm:$0xff]   ;;  %v2011_v15 = vld [vmem:[#allocation13 + $0x184] ss:$12 sps:$4 sm:$0xff]   ;;  %v2338_v16 = vmov 0.0   ;;  %s538_s11 = scalar_lea.vmem [#allocation16], %s2679_s18 }
  0xeb   : > { %1162 = vmatpush1.bf16.msra.mxu0 %v1959_v40  ;;  %1755 = vmatprep.subr.bf16.mxu1 %v1986_v60  ;;  %s2907_s26 = sld [smem:[#allocation28_spill]]  ;;  %s1472_s29 = sshll.u32 %s538_s11, 4  ;;  %s2786_s29 = int_to_ptr.vmem [resolvable:$true] %s1472_s29 }
  0xec   : > { %603 = vadd.xlane.f32.xlu1 %v600_v37  ;;  %601 = vadd.xlane.f32.xlu0 %v599_v38  ;;  %s1748_s7 = sshll.u32 %s2428_s6, 8  ;;  %s2908_s23 = sld [smem:[#allocation31_spill]] }
  0xed   : > { %1163 = vmatprep.subr.bf16.mxu0 %v1960_v41  ;;  %s1459_s18 = scalar_lea.sflag [#allocation5], %s2676_s13  ;;  %s2241_s6 = scalar_lea.vmem %s2786_s29, 256 }
  0xee   : > { %1756 = vmatpush3.bf16.msra.mxu1 %v1988_v62  ;;  %p2242_p8 = scmp.ne.s32.totalorder %s2786_s29, %s2241_s6  ;;  %s2341_s12 = smov [#allocation16]  }
  0xef   : > { %1164 = vmatpush1.bf16.msra.mxu0 %v1962_v42  ;;  %1757 = vmatprep.subr.bf16.mxu1 %v1991_v0  ;;  %s2245_s17 = sshll.u32 %s2341_s12, 4  ;;  %s2246_s17 = int_to_ptr.vmem [resolvable:$false] %s2245_s17 }
  0xf0   : > { %1165 = vmatprep.subr.bf16.mxu0 %v1963_v43  ;;  %s2247_s15 = scalar_lea.vmem %s2246_s17, 512  ;;  %p2248_p6 = scmp.lt.s32.totalorder %s2786_s29, %s2246_s17 }
  0xf1   : > { %p2909_p2 = scmp.ne.s32.totalorder %s2907_s26, 0  ;;  %p2249_p10 = scmp.lt.s32.totalorder %s2247_s15, %s2241_s6 }
  0xf2   : > { %1758 = vmatpush3.bf16.msra.mxu1 %v1993_v2  ;;  %s2791_s25 = scalar_lea.hbm %s2908_s23, %s1748_s7 }
  0xf3   : > { %1166 = vmatpush1.bf16.msra.mxu0 %v1965_v44  ;;  %1759 = vmatprep.subr.bf16.mxu1 %v1996_v4  ;;  %p2243_p3 = pnand %p2242_p8, %p2909_p2  ;;  %p2250_p0 = por %p2249_p10, %p2248_p6 }
  0xf4   : > { %1167 = vmatprep.subr.bf16.mxu0 %v1966_v45 }
  0xf5   : > { %p2244_p5 = pneg %p2243_p3 }
  0xf6   : > { %1760 = vmatpush3.bf16.msra.mxu1 %v1998_v6 }
  0xf7   : > { %1168 = vmatpush1.bf16.msra.mxu0 %v1968_v46  ;;  %1761 = vmatprep.subr.bf16.mxu1 %v2001_v8  ;;  %p2251_p1 = pnand %p2250_p0, %p2244_p5 }
  0xf8   : > { %1169 = vmatprep.subr.bf16.mxu0 %v1969_v47 }
  0xfa   : > { %1762 = vmatpush3.bf16.msra.mxu1 %v2003_v10 }
  0xfb   : > { %1170 = vmatpush1.bf16.msra.mxu0 %v1972_v49  ;;  %1763 = vmatprep.subr.bf16.mxu1 %v2006_v12 }
  0xfc   : > { %1171 = vmatprep.subr.bf16.mxu0 %v1974_v51 }
  0xfe   : > { %1764 = vmatpush3.bf16.msra.mxu1 %v2008_v14 }
  0xff   : > { %1172 = vmatpush1.bf16.msra.mxu0 %v1977_v53  ;;  %1789 = vmatprep.subr.bf16.mxu1 %v2338_v16 }
 0x100   : > { %1173 = vmatprep.subr.bf16.mxu0 %v1979_v55 }
 0x103   : > { %1174 = vmatpush1.bf16.msra.mxu0 %v1982_v57 }
 0x104   : > { %1175 = vmatprep.subr.bf16.mxu0 %v1984_v59 }
 0x107   : > { %1176 = vmatpush1.bf16.msra.mxu0 %v1987_v61 }
 0x108   : > { %1177 = vmatprep.subr.bf16.mxu0 %v1989_v63 }
 0x10b   : > { %1178 = vmatpush1.bf16.msra.mxu0 %v1992_v1 }
 0x10c   : > { %1179 = vmatprep.subr.bf16.mxu0 %v1994_v3 }
 0x10f   : > { %1180 = vmatpush1.bf16.msra.mxu0 %v1997_v5 }
 0x110   : > { %1181 = vmatprep.subr.bf16.mxu0 %v1999_v7 }
 0x113   : > { %1182 = vmatpush1.bf16.msra.mxu0 %v2002_v9 }
 0x114   : > { %1183 = vmatprep.subr.bf16.mxu0 %v2004_v11 }
 0x117   : > { %1184 = vmatpush1.bf16.msra.mxu0 %v2007_v13  ;;  %v2009_v13 = vld [vmem:[#allocation13 + $0x180] ss:$12 sps:$4 sm:$0xff]  }
 0x118   : > { %1196 = vmatprep.subr.bf16.mxu0 %v2011_v15  ;;  %v2012_v15 = vld [vmem:[#allocation13 + $0x188] ss:$12 sps:$4 sm:$0xff]  }
 0x171   : > { %v584_v17 = vpop.xlane.xlu1 %583  ;;  %v565_v18 = vpop.xlane.xlu0 %564 }
 0x172   : > { %v587_v25 = vadd.f32 %v584_v17, %v568_v19  ;;  %v569_v28 = vadd.f32 %v568_v19, %v565_v18  ;;  %v2015_v17 = vld [vmem:[#allocation13 + $0x19c] ss:$12 sps:$4 sm:$0xff]   ;;  %v2013_v18 = vld [vmem:[#allocation13 + $0x198] ss:$12 sps:$4 sm:$0xff]  }
 0x174   : > { %v607_v35 = vmax.f32 %v569_v28, %v587_v25 }
 0x175   : > { %v586_v20 = vpop.xlane.xlu1 %585  ;;  %v567_v24 = vpop.xlane.xlu0 %566 }
 0x176   : > { %v588_v21 = vadd.f32 %v586_v20, %v568_v19  ;;  %v570_v29 = vadd.f32 %v568_v19, %v567_v24  ;;  %v2023_v20 = vld [vmem:[#allocation13 + $0x1cc] ss:$12 sps:$4 sm:$0xff]   ;;  %v2024_v24 = vld [vmem:[#allocation13 + $0x1d0] ss:$12 sps:$4 sm:$0xff]  }
 0x178   : > { %v608_v31 = vmax.f32 %v570_v29, %v588_v21 }
 0x179   : > { %v604_v30 = vpop.xlane.xlu1 %603  ;;  %v602_v33 = vpop.xlane.xlu0 %601 }
 0x17a   : > { %v606_v32 = vadd.f32 %v604_v30, %v568_v19  ;;  %v605_v37 = vadd.f32 %v602_v33, %v568_v19  ;;  %v2020_v19 = vld [vmem:[#allocation13 + $0x1b8] ss:$12 sps:$4 sm:$0xff]   ;;  %v2031_v30 = vld [vmem:[#allocation13 + $0x1fc] ss:$12 sps:$4 sm:$0xff]   ;;  %v2035_v33 = vld [vmem:[#allocation13 + $0x214] ss:$12 sps:$4 sm:$0xff]  }
 0x17c   : > { %v610_v38 = vmax.f32 %v608_v31, %v606_v32  ;;  %v609_v39 = vmax.f32 %v607_v35, %v605_v37  ;;  %v2029_v31 = vld [vmem:[#allocation13 + $0x1f8] ss:$12 sps:$4 sm:$0xff]  }
 0x17e   : > { %v612_v40 = vsub.f32 %v570_v29, %v610_v38  ;;  %v618_v41 = vsub.f32 %v588_v21, %v610_v38  ;;  %v624_v42 = vsub.f32 %v606_v32, %v610_v38  ;;  %v611_v43 = vsub.f32 %v569_v28, %v609_v39  ;;  %v2021_v21 = vld [vmem:[#allocation13 + $0x1c8] ss:$12 sps:$4 sm:$0xff]   ;;  %v2025_v28 = vld [vmem:[#allocation13 + $0x1e0] ss:$12 sps:$4 sm:$0xff]   ;;  %v2033_v38 = vld [vmem:[#allocation13 + $0x210] ss:$12 sps:$4 sm:$0xff]  }
 0x17f   : > { %v617_v44 = vsub.f32 %v587_v25, %v609_v39  ;;  %v623_v48 = vsub.f32 %v605_v37, %v609_v39  ;;  %v2027_v25 = vld [vmem:[#allocation13 + $0x1e4] ss:$12 sps:$4 sm:$0xff]   ;;  %v2028_v29 = vld [vmem:[#allocation13 + $0x1e8] ss:$12 sps:$4 sm:$0xff]   ;;  %v2032_v32 = vld [vmem:[#allocation13 + $0x200] ss:$12 sps:$4 sm:$0xff]  }
 0x180   : > { %v615_v45 = vmul.f32 1.442695, %v612_v40  ;;  %v621_v46 = vmul.f32 1.442695, %v618_v41  ;;  %v627_v47 = vmul.f32 1.442695, %v624_v42 }
 0x181   : > { %v613_v49 = vmul.f32 1.442695, %v611_v43  ;;  %v619_v50 = vmul.f32 1.442695, %v617_v44  ;;  %v625_v51 = vmul.f32 1.442695, %v623_v48 }
 0x182   : > { %2049 = vpow2.f32 %v615_v45  ;;  %v2036_v39 = vld [vmem:[#allocation13 + $0x218] ss:$12 sps:$4 sm:$0xff]   ;;  %v2037_v43 = vld [vmem:[#allocation13 + $0x228] ss:$12 sps:$4 sm:$0xff]   ;;  %v2040_v44 = vld [vmem:[#allocation13 + $0x230] ss:$12 sps:$4 sm:$0xff]  }
 0x183   : > { %2051 = vpow2.f32 %v621_v46  ;;  %v2039_v40 = vld [vmem:[#allocation13 + $0x22c] ss:$12 sps:$4 sm:$0xff]   ;;  %v2041_v48 = vld [vmem:[#allocation15] sm:$0xff]  }
 0x184   : > { %2053 = vpow2.f32 %v627_v47 }
 0x185   : > { %2055 = vpow2.f32 %v613_v49  ;;  %v2042_v49 = vld [vmem:[#allocation15 + $0x8] sm:$0xff]  }
 0x186   : > { %2057 = vpow2.f32 %v619_v50  ;;  %v2043_v50 = vld [vmem:[#allocation15 + $0x10] sm:$0xff]  }
 0x187   : > { %2059 = vpow2.f32 %v625_v51  ;;  %v2046_v51 = vld [vmem:[#allocation15 + $0x28] sm:$0xff]  }
 0x18c   : > { %v2050_v52 = vpop.eup %2049 }
 0x18d   : > { %v2052_v53 = vpop.eup %2051 }
 0x18e   : > { %v2740_v54 = vpop.eup %2053  ;;  %v630_v55 = vadd.f32 %v2052_v53, %v2050_v52 }
 0x18f   : > { %v2056_v56 = vpop.eup %2055 }
 0x190   : > { %v2058_v57 = vpop.eup %2057  ;;  %v632_v58 = vadd.f32 %v2740_v54, %v630_v55 }
 0x191   : > { %v629_v59 = vadd.f32 %v2058_v57, %v2056_v56  ;;  %v2743_v60 = vpop.eup %2059 }
 0x192   : > { %2061 = vrcp.f32 %v632_v58 }
 0x193   : > { %v631_v61 = vadd.f32 %v2743_v60, %v629_v59 }
 0x195   : > { %2063 = vrcp.f32 %v631_v61 }
 0x19c   : > { %v2746_v62 = vpop.eup %2061 }
 0x19d   : > { %v643_v63 = vmul.f32 %v2746_v62, %v2052_v53  ;;  %v636_v0 = vmul.f32 %v2746_v62, %v2050_v52  ;;  %v650_v37 = vmul.f32 %v2746_v62, %v2740_v54  ;;  %v2047_v52 = vld [vmem:[#allocation15 + $0x30] sm:$0xff]   ;;  %v2048_v53 = vld [vmem:[#allocation15 + $0x38] sm:$0xff]  }
 0x19f   : > { %v2064_v1 = vpop.eup %2063  ;;  %v645_v2 = vadd.f32 1.0, %v643_v63  ;;  %v638_v3 = vadd.f32 1.0, %v636_v0  ;;  %v652_v42 = vadd.f32 1.0, %v650_v37  ;;  %v752_v63 = vld [vmem:[%s2843_s8] sm:$0x7] }
 0x1a0   : > { %v642_v4 = vmul.f32 %v2064_v1, %v2058_v57  ;;  %v635_v5 = vmul.f32 %v2064_v1, %v2056_v56  ;;  %v649_v35 = vmul.f32 %v2064_v1, %v2743_v60  ;;  %v754_v60 = vlaneseq }
 0x1a1   : > { %v647_v7 = vmul.f32 %v645_v2, %v2722_v23  ;;  %v640_v9 = vmul.f32 %v638_v3, %v2726_v27  ;;  %v2016_v23 = vld [vmem:[#allocation13 + $0x1a0] ss:$12 sps:$4 sm:$0xff]   ;;  %v654_v46 = vmul.f32 %v652_v42, %v2732_v34  ;;  %v2044_v34 = vld [vmem:[#allocation15 + $0x18] sm:$0xff]  }
 0x1a2   : > { %v644_v6 = vadd.f32 1.0, %v642_v4  ;;  %v637_v8 = vadd.f32 1.0, %v635_v5  ;;  %v2019_v27 = vld [vmem:[#allocation13 + $0x1b4] ss:$12 sps:$4 sm:$0xff]   ;;  %v651_v41 = vadd.f32 1.0, %v649_v35  ;;  %v755_v61 = vshrl.u32 %v754_v60, 7 }
 0x1a4   : > { %v646_v10 = vmul.f32 %v644_v6, %v2720_v22  ;;  %v639_v11 = vmul.f32 %v637_v8, %v2724_v26  ;;  %v2339_v22 = vmov 0   ;;  %v2017_v26 = vld [vmem:[#allocation13 + $0x1b0] ss:$12 sps:$4 sm:$0xff]   ;;  %v653_v45 = vmul.f32 %v651_v41, %v2735_v36  ;;  %v2045_v36 = vld [vmem:[#allocation15 + $0x20] sm:$0xff]  }
 0x1a5   : > { %v764_v62 = vsub.s32 2, %v755_v61  ;;  %v756_v0 = vsub.s32 0, %v755_v61  ;;  %v760_v1 = vsub.s32 1, %v755_v61 }
 0x1a6   : > { %v648_v12 = vpack.c.bf16 %v647_v7, %v646_v10  ;;  %v641_v14 = vpack.c.bf16 %v640_v9, %v639_v11  ;;  %v655_v47 = vpack.c.bf16 %v654_v46, %v653_v45 }
 0x1a7   : > { %v765_v2 = vrot.slane %v752_v63, %v764_v62  ;;  %v757_v3 = vrot.slane %v752_v63, %v756_v0 }
 0x1a8   : > { %1185 = vmatprep.mubr.bf16.mxu0 %v648_v12  ;;  %1271 = vmatprep.mubr.bf16.mxu1 %v648_v12 }
 0x1a9   : > { %1186 = vmatmul.mubr.bf16.vlgmr.msra.gmra.mrb[0].mxu0 %v641_v14  ;;  %1272 = vmatmul.mubr.bf16.vlgmr.msra.gmra.mrb[0].mxu1 %v641_v14 }
 0x1aa   : > { %1197 = vmatpush1.bf16.msra.mxu0 %v2009_v13  ;;  %1790 = vmatpush3.bf16.msra.mxu1 %v2012_v15 }
 0x1ab   : > { %1198 = vmatprep.subr.bf16.mxu0 %v2015_v17  ;;  %1791 = vmatprep.subr.bf16.mxu1 %v2338_v16 }
 0x1ac   : > { %1228 = vmatprep.mubr.bf16.mxu0 %v2339_v22  ;;  %1805 = vmatprep.mubr.msk.bf16.mxu1 %vm2340_vm0, %v2338_v16 }
 0x1ae   : > { %1199 = vmatpush1.bf16.msra.mxu0 %v2013_v18  ;;  %1792 = vmatpush3.bf16.msra.mxu1 %v2016_v23 }
 0x1af   : > { %1200 = vmatprep.subr.bf16.mxu0 %v2019_v27  ;;  %1793 = vmatprep.subr.bf16.mxu1 %v2338_v16 }
 0x1b2   : > { %1201 = vmatpush1.bf16.msra.mxu0 %v2017_v26  ;;  %1794 = vmatpush3.bf16.msra.mxu1 %v2020_v19 }
 0x1b3   : > { %1202 = vmatprep.subr.bf16.mxu0 %v2023_v20  ;;  %1795 = vmatprep.subr.bf16.mxu1 %v2338_v16 }
 0x1b6   : > { %1203 = vmatpush1.bf16.msra.mxu0 %v2021_v21  ;;  %1796 = vmatpush3.bf16.msra.mxu1 %v2024_v24 }
 0x1b7   : > { %1204 = vmatprep.subr.bf16.mxu0 %v2027_v25  ;;  %1797 = vmatprep.subr.bf16.mxu1 %v2338_v16 }
 0x1ba   : > { %1205 = vmatpush1.bf16.msra.mxu0 %v2025_v28  ;;  %1798 = vmatpush3.bf16.msra.mxu1 %v2028_v29 }
 0x1bb   : > { %1206 = vmatprep.subr.bf16.mxu0 %v2031_v30  ;;  %1799 = vmatprep.subr.bf16.mxu1 %v2338_v16 }
 0x1be   : > { %1207 = vmatpush1.bf16.msra.mxu0 %v2029_v31  ;;  %1800 = vmatpush3.bf16.msra.mxu1 %v2032_v32 }
 0x1bf   : > { %1208 = vmatprep.subr.bf16.mxu0 %v2035_v33  ;;  %1801 = vmatprep.subr.bf16.mxu1 %v2338_v16 }
 0x1c2   : > { %1209 = vmatpush1.bf16.msra.mxu0 %v2033_v38  ;;  %1802 = vmatpush3.bf16.msra.mxu1 %v2036_v39 }
 0x1c3   : > { %1210 = vmatprep.subr.bf16.mxu0 %v2039_v40  ;;  %1803 = vmatprep.subr.bf16.mxu1 %v2338_v16  ;;  %v1731_v40 = vld [vmem:[%s2906_s14] ss:$0 sm:$0xff] }
 0x1c6   : > { %1211 = vmatpush1.bf16.msra.mxu0 %v2037_v43  ;;  %1804 = vmatpush3.bf16.msra.mxu1 %v2040_v44 }
 0x1c7   : > { %1809 = vmatprep.subr.bf16.mxu1 %v2338_v16 }
 0x1c9   : > { %1229 = vmatmul.mubr.bf16.vlgmr.msra.gmra.mrb[0].mxu0 %v655_v47  ;;  %1806 = vmatmul.mubr.bf16.vlgmr.msra.gmra.mrb[4].mxu1 %v655_v47 }
 0x1ca   : > { %1825 = vmatprep.mubr.msk.bf16.mxu1 %vm2340_vm0, %v2338_v16  ;;  %1810 = vmatpush3.bf16.msra.mxu1 %v2041_v48 }
 0x1cb   : > { %1811 = vmatprep.subr.bf16.mxu1 %v2338_v16 }
 0x1ce   : > { %1812 = vmatpush3.bf16.msra.mxu1 %v2042_v49 }
 0x1cf   : > { %1813 = vmatprep.subr.bf16.mxu1 %v2338_v16 }
 0x1d2   : > { %1814 = vmatpush3.bf16.msra.mxu1 %v2043_v50 }
 0x1d3   : > { %1815 = vmatprep.subr.bf16.mxu1 %v2338_v16 }
 0x1d6   : > { %1816 = vmatpush3.bf16.msra.mxu1 %v2044_v34 }
 0x1d7   : > { %1817 = vmatprep.subr.bf16.mxu1 %v2338_v16 }
 0x1da   : > { %1818 = vmatpush3.bf16.msra.mxu1 %v2045_v36 }
 0x1db   : > { %1819 = vmatprep.subr.bf16.mxu1 %v2338_v16 }
 0x1de   : > { %1820 = vmatpush3.bf16.msra.mxu1 %v2046_v51 }
 0x1df   : > { %1821 = vmatprep.subr.bf16.mxu1 %v2338_v16 }
 0x1e2   : > { %1822 = vmatpush3.bf16.msra.mxu1 %v2047_v52 }
 0x1e3   : > { %1823 = vmatprep.subr.bf16.mxu1 %v2338_v16  ;;  %v761_v16 = vrot.slane %v752_v63, %v760_v1 }
 0x1e6   : > { %1824 = vmatpush3.bf16.msra.mxu1 %v2048_v53 }
 0x27c   : > { %v1765_v54 = vpop.f32.mrb[0].mxu1 }
 0x27d   : > { %v1766_v55 = vpop.f32.mrb[1].mxu1 }
 0x27e   : > { %v1767_v56 = vadd.f32 %v1766_v55, %v1765_v54  ;;  %v1768_v57 = vpop.f32.mrb[2].mxu1 }
 0x27f   : > { %v1769_v58 = vpop.f32.mrb[3].mxu1 }
 0x280   : > { %v1770_v59 = vadd.f32 %v1769_v58, %v1768_v57  ;;  %v1274_v4 = vadd.f32 %v1767_v56, %v765_v2 }
 0x282   : > { %v1277_v13 = vadd.f32 %v1770_v59, %v765_v2 }
 0x29c   : > { %v1230_v5 = vpop.f32.mrb[0].mxu0  ;;  %v1314_v6 = vpop.f32.mrb[4].mxu1 }
 0x29d   : > { %v1829_v7 = vadd.f32 %v1230_v5, %v757_v3  ;;  %v1315_v8 = vadd.f32 %v1314_v6, %v1274_v4  ;;  %v1232_v9 = vpop.f32.mrb[1].mxu0  ;;  %v1807_v10 = vpop.f32.mrb[5].mxu1 }
 0x29e   : > { %v1830_v11 = vadd.f32 %v1232_v9, %v761_v16  ;;  %v1234_v12 = vpop.f32.mrb[2].mxu0  ;;  %v1317_v14 = vpop.f32.mrb[6].mxu1 }
 0x29f   : > { %vm1321_vm1 = vcmp.gt.f32.partialorder %v1829_v7, 0.0  ;;  %v1327_v15 = vmul.f32 0.1, %v1829_v7  ;;  %v1329_v17 = vmul.f32 0.1, %v1315_v8  ;;  %v1831_v23 = vadd.f32 %v1234_v12, %v757_v3  ;;  %v1236_v22 = vpop.f32.mrb[3].mxu0 }
 0x2a0   : > { %vm1322_vm2 = vcmp.gt.f32.partialorder %v1830_v11, 0.0  ;;  %v1328_v18 = vmul.f32 0.1, %v1830_v11  ;;  %v1318_v27 = vadd.f32 %v1317_v14, %v1277_v13  ;;  %v1808_v26 = vpop.f32.mrb[7].mxu1  ;;  %vm1323_vm3 = vcmp.gt.f32.partialorder %v1315_v8, 0.0 }
 0x2a1   : > { %v1333_v19 = vsel %vm1321_vm1, %v1829_v7, %v1327_v15  ;;  %v1832_v20 = vadd.f32 %v1236_v22, %v761_v16  ;;  %vm1324_vm4 = vcmp.gt.f32.partialorder %v1831_v23, 0.0  ;;  %v1330_v24 = vmul.f32 0.1, %v1831_v23 }
 0x2a2   : > { %v1334_v21 = vsel %vm1322_vm2, %v1830_v11, %v1328_v18  ;;  %v1332_v28 = vmul.f32 0.1, %v1318_v27  ;;  %v1335_v30 = vsel %vm1323_vm3, %v1315_v8, %v1329_v17  ;;  %vm1326_vm6 = vcmp.gt.f32.partialorder %v1318_v27, 0.0 }
 0x2a3   : > { %v1339_v25 = vadd.f32 %v1334_v21, %v1333_v19  ;;  %vm1325_vm5 = vcmp.gt.f32.partialorder %v1832_v20, 0.0  ;;  %v1331_v29 = vmul.f32 0.1, %v1832_v20  ;;  %v1336_v31 = vsel %vm1324_vm4, %v1831_v23, %v1330_v24 }
 0x2a4   : > { %v1338_v37 = vsel %vm1326_vm6, %v1318_v27, %v1332_v28 }
 0x2a5   : > { %v1341_v32 = vadd.f32 %v1339_v25, %v1335_v30  ;;  %v1337_v33 = vsel %vm1325_vm5, %v1832_v20, %v1331_v29 }
 0x2a6   : > { %v1340_v35 = vadd.f32 %v1337_v33, %v1336_v31 }
 0x2a8   : > { %v1342_v38 = vadd.f32 %v1340_v35, %v1338_v37 }
 0x2aa   : > { %v1343_v39 = vpack.c.bf16 %v1342_v38, %v1341_v32 }
 0x2ac   : > { %1826 = vmatmul.mubr.bf16.vlgmr.msra.gmra.mrb[8].mxu1 %v1343_v39 }
 0x37f   : > { %v1449_v41 = vpop.f32.mrb[8].mxu1 }
 0x380   : > { %v1450_v42 = vadd.f32 %v1731_v40, %v1449_v41  ;;  %v1827_v43 = vpop.f32.mrb[9].mxu1 }
 0x381   : > { %v1452_v44 = vpop.f32.mrb[10].mxu1 }
 0x382   : > { %1456 = vst [vmem:[%s538_s11] sm:$0xff] %v1450_v42  ;;  %v1453_v45 = vadd.f32 %v1731_v40, %v1452_v44  ;;  %v1828_v46 = vpop.f32.mrb[11].mxu1 }
 0x384   : > { %1457 = vst [vmem:[%s538_s11 + $0x8] sm:$0xff] %v1453_v45 }
 0x385   : > { %2254 = shalt.err (!%p2251_p1)
}
 0x386   : > { %s2255_s30 = scalar_lea.hbm %s2791_s25, 256  ;;  %s2259_s22 = scalar_lea.hbm %s2908_s23, 512 }
 0x387   : > { %p2256_p12 = scmp.ne.s32.totalorder %s2791_s25, %s2255_s30  ;;  %p2260_p7 = scmp.lt.u32.totalorder %s2791_s25, %s2908_s23 }
 0x388   : > { %p2261_p13 = scmp.lt.u32.totalorder %s2259_s22, %s2255_s30  ;;  %p2263_p8 = scmp.lt.u32.totalorder %s2255_s30, %s2791_s25 }
 0x389   : > { %p2257_p4 = pnand %p2256_p12, %p2909_p2 }
 0x38a   : > { %p2262_p9 = por %p2261_p13, %p2260_p7 }
 0x38b   : > { %p2258_p11 = pneg %p2257_p4 }
 0x38c   : > { %p2264_p3 = por %p2263_p8, %p2262_p9 }
 0x38e   : > { %p2265_p5 = pnand %p2264_p3, %p2258_p11 }
 0x390   : > { %2268 = shalt.err (!%p2265_p5)
}
 0x391   : > { %s2342_s14 = smov 128   ;;  %s2343_s11 = smov 8  }
 0x392   : > { %1859 = dma.vmem_to_hbm [thread:$0]  (%p2909_p2), %s2786_s29, 256, %s2791_s25, %s1459_s18, %s2342_s14, %s2342_s14, %s2343_s11  }
 0x393 PF: > { %s2910_s7 = sld [smem:[#allocation23_spill]]  ;;  %s2911_s24 = sld [smem:[#allocation25_spill]] }
 0x394   : > { %s2912_s16 = sld [smem:[#allocation24_spill]] }
 0x399   : > { %s1487_s6 = sand.u32 1, %s2910_s7   ;;  %p2913_p6 = scmp.ne.s32.totalorder %s2911_s24, 0 }
 0x39a   : > { %p2914_p10 = scmp.ge.s32.totalorder %s2912_s16, 2  ;;  %s1488_s12 = scalar_lea.sflag [#allocation5], %s1487_s6 }
 0x39c   : > { %p1885_p0 = pnand %p2914_p10, %p2913_p6 }
 0x39e   : > { %2306 = dma.done.wait (!%p1885_p0), %s1488_s12, 256  }
 0x39f   : > { %2308 = vsyncadd (!%p1885_p0), %s1488_s12, 4294967040  ;;  %s2915_s22 = sld [smem:[#allocation26_spill]]  ;;  %s2916_s17 = sld [smem:[#allocation27_spill]] }
 0x3a0   : > { %s2917_s19 = smov %s2315_s20  ;;  %s2918_s20 = smov %s2319_s21 }
 0x3a5   : > { %p31_p1 = scmp.ge.s32.totalorder %s2915_s22, 4   ;;  %s2919_s21 = smov %s2916_s17 }
 0x3a7   :  { %33 = sbr.rel (!%p31_p1) target bundleno = 15 (0xf), region = 150 }
 0x3ae   :  { %1493 = vsyncpa [#allocation4], 1 }
 0x3af   :  { %1495 = vsyncpa [#allocation4 + $0x1], 1 }
 0x3b0   :  { %1496 = vsyncpa [#allocation8], 1 }
 0x3b1   :  { %1498 = vsyncpa [#allocation8 + $0x1], 1 }
 0x3b2   :  { %1499 = vsyncpa [#allocation14], 1 }
 0x3b3   :  { %1500 = vsyncpa [#allocation5], 1 }
 0x3b4   :  { %1502 = vsyncpa [#allocation5 + $0x1], 1 }
 0x3b5   :  { %1503 = vsyncpa [#allocation6], 1 }
 0x3b6   :  { %1505 = vsyncpa [#allocation6 + $0x1], 1 }
 0x3b7   :  { %1506 = vsyncpa [#allocation12], 1 }

</bundles_post_ra>
